<compile_context>
chip_gen: v7x
topology: tpu7x:2x2x1
jax: 0.10.0
libtpu: 0.0.40
codegen_flags: <defaults>
</compile_context>

<pallas_src>
import math
import jax
import jax.numpy as jnp
from jax import lax
from jax.experimental import pallas as pl
from jax.experimental.pallas import tpu as pltpu


# ----------------------------------------------------------------------------- kernel
def _birnn_kernel(ids_ref, ptab_ref, wh_ref, out_ref):
    """Single-layer bidirectional tanh-RNN, embedding gather fused, directions lane-packed.

    ids_ref : (L*BB, 2) int32  time-major rows (r = t*BB + b);
                               col 0 = token at time t, col 1 = token at time L-1-t, offset by V
    ptab_ref: (2V, 2H) f32     pre-projected dual table (fwd rows in lanes [:H], bwd in [H:])
    wh_ref  : (2H, 2H) f32     block-diagonal [[W_hh_f^T, 0], [0, W_hh_b^T]]
    out_ref : (L, BB, 2H) f32  hidden states; forward in [:, :, :H], backward in [:, :, H:]
    """
    L, BB, H2 = out_ref.shape
    H = H2 // 2
    V2 = ptab_ref.shape[0]
    LBB = L * BB

    # Hoist invariant loads out of the recurrence.
    wh = wh_ref[...]
    ids = ids_ref[...]

    # Fused gather + input projection + bias + backward time-reversal: one-hot rows have a
    # single 1 in each half of the vocab axis (fwd token / V-offset bwd token), so one MXU
    # pass against ptab yields the full per-step drive xsel (no reshapes/reversals needed).
    iota = lax.broadcasted_iota(jnp.int32, (LBB, V2), 1)
    onehot = ((iota == ids[:, 0:1]).astype(jnp.float32)
              + (iota == ids[:, 1:2]).astype(jnp.float32))                    # (L*BB, 2V)
    xsel = jnp.dot(onehot, ptab_ref[...], preferred_element_type=jnp.float32)  # (L*BB, 2H)

    # Lane-packed recurrent state: fwd in lanes [:H], bwd in lanes [H:]; hidden=None -> zeros.
    h = jnp.zeros((BB, H2), jnp.float32)
    hs = []
    # L is small and static -> fully unroll; per-step critical path is dot -> add -> tanh.
    for t in range(L):
        h = jnp.tanh(jnp.dot(h, wh, preferred_element_type=jnp.float32)
                     + xsel[t * BB:(t + 1) * BB, :])
        hs.append(h)

    # Register accumulation -> ONE bulk store. The bwd state computed at step t corresponds
    # to original time L-1-t, so re-align it by static (Python-level) re-indexing.
    out_fwd = jnp.stack([hs[t][:, :H] for t in range(L)], axis=0)          # (L, BB, H)
    out_bwd = jnp.stack([hs[L - 1 - t][:, H:] for t in range(L)], axis=0)  # (L, BB, H)
    out_ref[...] = jnp.concatenate([out_fwd, out_bwd], axis=-1)            # single store


# ----------------------------------------------------------------------------- wrapper
def _prep_ids(tokens, vocab_size):
    """tokens (BB, L) int32 -> (L*BB, 2) int32 time-major ids (col1 = reversed time, +V)."""
    BB, L = tokens.shape
    tok_t = tokens.T                                       # (L, BB)
    fwd = tok_t.reshape(L * BB, 1)
    bwd = tok_t[::-1].reshape(L * BB, 1) + vocab_size
    return jnp.concatenate([fwd, bwd], axis=1)


def birnn(tokens, params):
    """tokens: (BB, L) int32. Returns out (L, BB, 2H): fwd in [..., :H], bwd in [..., H:]."""
    BB, L = tokens.shape
    H2 = params["wh_bd"].shape[0]
    V = params["ptab"].shape[0] // 2
    ids = _prep_ids(tokens, V)                             # tiny int32 prep (fuses in XLA)
    vmem = pl.BlockSpec(memory_space=pltpu.MemorySpace.VMEM)
    return pl.pallas_call(
        _birnn_kernel,
        out_shape=jax.ShapeDtypeStruct((L, BB, H2), jnp.float32),
        in_specs=[vmem, vmem, vmem],
        out_specs=vmem,
    )(ids, params["ptab"], params["wh_bd"])


def rnn_encoder_forward(x1, x2, params, hidden_size, num_dir=2):
    # dropout(p=0.5) after embedding: identity in eval mode (embedding is folded into ptab).
    B, L1 = x1.shape
    L2 = x2.shape[1]
    if L1 == L2:
        # Single fused launch: stack x1/x2 along batch; weights loaded from HBM once.
        out = birnn(jnp.concatenate([x1, x2], axis=0), params)       # (L, 2B, 2H)
        c_all = jnp.transpose(out, (1, 2, 0))                        # one transpose -> (2B, 2H, L)
        words_emb = jnp.concatenate([c_all[:B], c_all[B:]], axis=2)  # (B, 2H, L1+L2)
        hn2_fwd = out[L2 - 1, B:, :hidden_size]                      # fwd final state of rnn1(x2)
    else:
        out1 = birnn(x1, params)
        out2 = birnn(x2, params)                                     # original module reuses rnn1 on x2
        words_emb = jnp.concatenate([jnp.transpose(out1, (1, 2, 0)),
                                     jnp.transpose(out2, (1, 2, 0))], axis=2)
        hn2_fwd = out2[L2 - 1, :, :hidden_size]
    # hidden[0] on h_n (2, B, H) -> (B, H); transpose -> (H, B); view(-1, 2H)
    sent_emb = jnp.transpose(hn2_fwd, (1, 0)).reshape(-1, hidden_size * num_dir)
    return words_emb, sent_emb


# ----------------------------------------------------------------------------- params
def init_params(key, vocab_size, embed_size, hidden_size):
    ks = jax.random.split(key, 9)
    embed_w = jax.random.uniform(ks[0], (vocab_size, embed_size), jnp.float32, -0.1, 0.1)
    stdv = 1.0 / math.sqrt(hidden_size)

    def u(k, shape):
        return jax.random.uniform(k, shape, jnp.float32, -stdv, stdv)

    # PyTorch nn.RNN parameter shapes: W_ih (H, E), W_hh (H, H), b_ih (H,), b_hh (H,)
    w_ih_f, w_hh_f = u(ks[1], (hidden_size, embed_size)), u(ks[2], (hidden_size, hidden_size))
    b_ih_f, b_hh_f = u(ks[3], (hidden_size,)), u(ks[4], (hidden_size,))
    w_ih_b, w_hh_b = u(ks[5], (hidden_size, embed_size)), u(ks[6], (hidden_size, hidden_size))
    b_ih_b, b_hh_b = u(ks[7], (hidden_size,)), u(ks[8], (hidden_size,))

    H, V = hidden_size, vocab_size
    # One-time weight folding (exact; gather commutes with the row-wise projection):
    #   ptab  (2V, 2H): rows 0..V-1 = [embed@W_ih_f^T + b_f | 0], rows V..2V-1 = [0 | embed@W_ih_b^T + b_b]
    #   wh_bd (2H, 2H): block-diagonal [[W_hh_f^T, 0], [0, W_hh_b^T]]  (padding rows exactly zero)
    ptab_f = embed_w @ w_ih_f.T + (b_ih_f + b_hh_f)
    ptab_b = embed_w @ w_ih_b.T + (b_ih_b + b_hh_b)
    zv = jnp.zeros((V, H), jnp.float32)
    ptab = jnp.concatenate([jnp.concatenate([ptab_f, zv], axis=1),
                            jnp.concatenate([zv, ptab_b], axis=1)], axis=0)
    zh = jnp.zeros((H, H), jnp.float32)
    wh_bd = jnp.concatenate([jnp.concatenate([w_hh_f.T, zh], axis=1),
                             jnp.concatenate([zh, w_hh_b.T], axis=1)], axis=0)
    params = dict(ptab=ptab, wh_bd=wh_bd)
    # Original (unfolded) weights kept only for the numerical reference check.
    raw = dict(w_ih_f=w_ih_f, w_hh_f=w_hh_f, b_f=b_ih_f + b_hh_f,
               w_ih_b=w_ih_b, w_hh_b=w_hh_b, b_b=b_ih_b + b_hh_b)
    # rnn2 / fc parameters exist in the PyTorch module but are unused in forward().
    return embed_w, params, raw


# ----------------------------------------------------------------------------- reference
def _birnn_ref(emb, raw):
    x = jnp.transpose(emb, (1, 0, 2)).astype(jnp.float32)            # (L, B, E)
    B = x.shape[1]
    H = raw["w_hh_f"].shape[0]
    h0 = jnp.zeros((B, H), jnp.float32)

    def fwd(h, xt):
        h = jnp.tanh(xt @ raw["w_ih_f"].T + h @ raw["w_hh_f"].T + raw["b_f"])
        return h, h

    def bwd(h, xt):
        h = jnp.tanh(xt @ raw["w_ih_b"].T + h @ raw["w_hh_b"].T + raw["b_b"])
        return h, h

    hf, outf = lax.scan(fwd, h0, x)
    hb, outb_rev = lax.scan(bwd, h0, x[::-1])
    outputs = jnp.concatenate([outf, outb_rev[::-1]], axis=-1)       # (L, B, 2H)
    return jnp.transpose(outputs, (1, 0, 2)), jnp.stack([hf, hb], axis=0)


# ----------------------------------------------------------------------------- main
if __name__ == "__main__":
    vocab_size, embed_size, hidden_size = 50, 16, 32
    max_len = (8, 8)          # (L1, L2)
    feature_base_dim = 64     # only used by the (unused) fc head
    B = 2
    num_dir = 2

    key = jax.random.PRNGKey(0)
    kp, kx1, kx2 = jax.random.split(key, 3)
    embed_w, params, raw = init_params(kp, vocab_size, embed_size, hidden_size)
    x1 = jax.random.randint(kx1, (B, max_len[0]), 0, vocab_size, dtype=jnp.int32)
    x2 = jax.random.randint(kx2, (B, max_len[1]), 0, vocab_size, dtype=jnp.int32)

    fwd_fn = jax.jit(rnn_encoder_forward, static_argnums=(3, 4))
    words_emb, sent_emb = fwd_fn(x1, x2, params, hidden_size, num_dir)
    jax.block_until_ready((words_emb, sent_emb))

    # shape checks (mirror the PyTorch semantics)
    assert words_emb.shape == (B, num_dir * hidden_size, max_len[0] + max_len[1])
    assert sent_emb.shape == ((hidden_size * B) // (hidden_size * num_dir),
                              hidden_size * num_dir)

    # numeric check against a pure-JAX reference using the ORIGINAL (unfolded) weights
    o1_ref, _ = _birnn_ref(jnp.take(embed_w, x1, axis=0), raw)
    o2_ref, hn_ref = _birnn_ref(jnp.take(embed_w, x2, axis=0), raw)
    words_ref = jnp.concatenate(
        [jnp.transpose(o1_ref, (0, 2, 1)), jnp.transpose(o2_ref, (0, 2, 1))], axis=2)
    sent_ref = jnp.transpose(hn_ref[0], (1, 0)).reshape(-1, hidden_size * num_dir)
    assert jnp.allclose(words_emb, words_ref, atol=5e-3, rtol=5e-3)
    assert jnp.allclose(sent_emb, sent_ref, atol=5e-3, rtol=5e-3)

    print("KERNEL_OK")
</pallas_src>

<mosaic_0001>
module attributes {stable_mosaic.version = 11 : i64} {
  func.func @_birnn_kernel(%arg0: memref<32x2xi32, #tpu.memory_space<vmem>>, %arg1: memref<100x64xf32, #tpu.memory_space<vmem>>, %arg2: memref<64x64xf32, #tpu.memory_space<vmem>>, %arg3: memref<8x4x64xf32, #tpu.memory_space<vmem>>) attributes {dimension_semantics = [], scalar_prefetch = 0 : i64, scratch_operands = 0 : i64, tpu.core_type = #tpu.core_type<tc>} {
    %c0 = arith.constant 0 : index
    %c0_0 = arith.constant 0 : index
    %0 = vector.load %arg2[%c0, %c0_0] : memref<64x64xf32, #tpu.memory_space<vmem>>, vector<64x64xf32>
    %c0_1 = arith.constant 0 : index
    %c0_2 = arith.constant 0 : index
    %1 = vector.load %arg0[%c0_1, %c0_2] : memref<32x2xi32, #tpu.memory_space<vmem>>, vector<32x2xi32>
    %2 = tpu.iota {dimensions = array<i32: 1>} : vector<32x100xi32>
    %3 = vector.extract_strided_slice %1 {offsets = [0, 0], sizes = [32, 1], strides = [1, 1]} : vector<32x2xi32> to vector<32x1xi32>
    %4 = vector.broadcast %3 : vector<32x1xi32> to vector<32x100xi32>
    %5 = arith.cmpi eq, %2, %4 : vector<32x100xi32>
    %6 = arith.extui %5 : vector<32x100xi1> to vector<32x100xi32>
    %7 = arith.sitofp %6 : vector<32x100xi32> to vector<32x100xf32>
    %8 = vector.extract_strided_slice %1 {offsets = [0, 1], sizes = [32, 1], strides = [1, 1]} : vector<32x2xi32> to vector<32x1xi32>
    %9 = vector.broadcast %8 : vector<32x1xi32> to vector<32x100xi32>
    %10 = arith.cmpi eq, %2, %9 : vector<32x100xi32>
    %11 = arith.extui %10 : vector<32x100xi1> to vector<32x100xi32>
    %12 = arith.sitofp %11 : vector<32x100xi32> to vector<32x100xf32>
    %13 = arith.addf %7, %12 : vector<32x100xf32>
    %c0_3 = arith.constant 0 : index
    %c0_4 = arith.constant 0 : index
    %14 = vector.load %arg1[%c0_3, %c0_4] : memref<100x64xf32, #tpu.memory_space<vmem>>, vector<100x64xf32>
    %cst = arith.constant dense<0.000000e+00> : vector<32x64xf32>
    %15 = tpu.matmul %13, %14, %cst {dimension_numbers = #tpu.dot_dimension_numbers<[1], [0], [0], [1], [0, 0, 1, 1], [], []>} : vector<32x100xf32>, vector<100x64xf32>, vector<32x64xf32> -> vector<32x64xf32>
    %cst_5 = arith.constant 0.000000e+00 : f32
    %16 = vector.broadcast %cst_5 : f32 to vector<4x64xf32>
    %cst_6 = arith.constant dense<0.000000e+00> : vector<4x64xf32>
    %17 = tpu.matmul %16, %0, %cst_6 {dimension_numbers = #tpu.dot_dimension_numbers<[1], [0], [0], [1], [0, 0, 1, 1], [], []>} : vector<4x64xf32>, vector<64x64xf32>, vector<4x64xf32> -> vector<4x64xf32>
    %18 = vector.extract_strided_slice %15 {offsets = [0, 0], sizes = [4, 64], strides = [1, 1]} : vector<32x64xf32> to vector<4x64xf32>
    %19 = arith.addf %17, %18 : vector<4x64xf32>
    %20 = math.tanh %19 : vector<4x64xf32>
    %cst_7 = arith.constant dense<0.000000e+00> : vector<4x64xf32>
    %21 = tpu.matmul %20, %0, %cst_7 {dimension_numbers = #tpu.dot_dimension_numbers<[1], [0], [0], [1], [0, 0, 1, 1], [], []>} : vector<4x64xf32>, vector<64x64xf32>, vector<4x64xf32> -> vector<4x64xf32>
    %22 = vector.extract_strided_slice %15 {offsets = [4, 0], sizes = [4, 64], strides = [1, 1]} : vector<32x64xf32> to vector<4x64xf32>
    %23 = arith.addf %21, %22 : vector<4x64xf32>
    %24 = math.tanh %23 : vector<4x64xf32>
    %cst_8 = arith.constant dense<0.000000e+00> : vector<4x64xf32>
    %25 = tpu.matmul %24, %0, %cst_8 {dimension_numbers = #tpu.dot_dimension_numbers<[1], [0], [0], [1], [0, 0, 1, 1], [], []>} : vector<4x64xf32>, vector<64x64xf32>, vector<4x64xf32> -> vector<4x64xf32>
    %26 = vector.extract_strided_slice %15 {offsets = [8, 0], sizes = [4, 64], strides = [1, 1]} : vector<32x64xf32> to vector<4x64xf32>
    %27 = arith.addf %25, %26 : vector<4x64xf32>
    %28 = math.tanh %27 : vector<4x64xf32>
    %cst_9 = arith.constant dense<0.000000e+00> : vector<4x64xf32>
    %29 = tpu.matmul %28, %0, %cst_9 {dimension_numbers = #tpu.dot_dimension_numbers<[1], [0], [0], [1], [0, 0, 1, 1], [], []>} : vector<4x64xf32>, vector<64x64xf32>, vector<4x64xf32> -> vector<4x64xf32>
    %30 = vector.extract_strided_slice %15 {offsets = [12, 0], sizes = [4, 64], strides = [1, 1]} : vector<32x64xf32> to vector<4x64xf32>
    %31 = arith.addf %29, %30 : vector<4x64xf32>
    %32 = math.tanh %31 : vector<4x64xf32>
    %cst_10 = arith.constant dense<0.000000e+00> : vector<4x64xf32>
    %33 = tpu.matmul %32, %0, %cst_10 {dimension_numbers = #tpu.dot_dimension_numbers<[1], [0], [0], [1], [0, 0, 1, 1], [], []>} : vector<4x64xf32>, vector<64x64xf32>, vector<4x64xf32> -> vector<4x64xf32>
    %34 = vector.extract_strided_slice %15 {offsets = [16, 0], sizes = [4, 64], strides = [1, 1]} : vector<32x64xf32> to vector<4x64xf32>
    %35 = arith.addf %33, %34 : vector<4x64xf32>
    %36 = math.tanh %35 : vector<4x64xf32>
    %cst_11 = arith.constant dense<0.000000e+00> : vector<4x64xf32>
    %37 = tpu.matmul %36, %0, %cst_11 {dimension_numbers = #tpu.dot_dimension_numbers<[1], [0], [0], [1], [0, 0, 1, 1], [], []>} : vector<4x64xf32>, vector<64x64xf32>, vector<4x64xf32> -> vector<4x64xf32>
    %38 = vector.extract_strided_slice %15 {offsets = [20, 0], sizes = [4, 64], strides = [1, 1]} : vector<32x64xf32> to vector<4x64xf32>
    %39 = arith.addf %37, %38 : vector<4x64xf32>
    %40 = math.tanh %39 : vector<4x64xf32>
    %cst_12 = arith.constant dense<0.000000e+00> : vector<4x64xf32>
    %41 = tpu.matmul %40, %0, %cst_12 {dimension_numbers = #tpu.dot_dimension_numbers<[1], [0], [0], [1], [0, 0, 1, 1], [], []>} : vector<4x64xf32>, vector<64x64xf32>, vector<4x64xf32> -> vector<4x64xf32>
    %42 = vector.extract_strided_slice %15 {offsets = [24, 0], sizes = [4, 64], strides = [1, 1]} : vector<32x64xf32> to vector<4x64xf32>
    %43 = arith.addf %41, %42 : vector<4x64xf32>
    %44 = math.tanh %43 : vector<4x64xf32>
    %cst_13 = arith.constant dense<0.000000e+00> : vector<4x64xf32>
    %45 = tpu.matmul %44, %0, %cst_13 {dimension_numbers = #tpu.dot_dimension_numbers<[1], [0], [0], [1], [0, 0, 1, 1], [], []>} : vector<4x64xf32>, vector<64x64xf32>, vector<4x64xf32> -> vector<4x64xf32>
    %46 = vector.extract_strided_slice %15 {offsets = [28, 0], sizes = [4, 64], strides = [1, 1]} : vector<32x64xf32> to vector<4x64xf32>
    %47 = arith.addf %45, %46 : vector<4x64xf32>
    %48 = math.tanh %47 : vector<4x64xf32>
    %49 = vector.extract_strided_slice %20 {offsets = [0, 0], sizes = [4, 32], strides = [1, 1]} : vector<4x64xf32> to vector<4x32xf32>
    %50 = vector.extract_strided_slice %24 {offsets = [0, 0], sizes = [4, 32], strides = [1, 1]} : vector<4x64xf32> to vector<4x32xf32>
    %51 = vector.extract_strided_slice %28 {offsets = [0, 0], sizes = [4, 32], strides = [1, 1]} : vector<4x64xf32> to vector<4x32xf32>
    %52 = vector.extract_strided_slice %32 {offsets = [0, 0], sizes = [4, 32], strides = [1, 1]} : vector<4x64xf32> to vector<4x32xf32>
    %53 = vector.extract_strided_slice %36 {offsets = [0, 0], sizes = [4, 32], strides = [1, 1]} : vector<4x64xf32> to vector<4x32xf32>
    %54 = vector.extract_strided_slice %40 {offsets = [0, 0], sizes = [4, 32], strides = [1, 1]} : vector<4x64xf32> to vector<4x32xf32>
    %55 = vector.extract_strided_slice %44 {offsets = [0, 0], sizes = [4, 32], strides = [1, 1]} : vector<4x64xf32> to vector<4x32xf32>
    %56 = vector.extract_strided_slice %48 {offsets = [0, 0], sizes = [4, 32], strides = [1, 1]} : vector<4x64xf32> to vector<4x32xf32>
    %57 = vector.shape_cast %49 : vector<4x32xf32> to vector<1x4x32xf32>
    %58 = vector.shape_cast %50 : vector<4x32xf32> to vector<1x4x32xf32>
    %59 = vector.shape_cast %51 : vector<4x32xf32> to vector<1x4x32xf32>
    %60 = vector.shape_cast %52 : vector<4x32xf32> to vector<1x4x32xf32>
    %61 = vector.shape_cast %53 : vector<4x32xf32> to vector<1x4x32xf32>
    %62 = vector.shape_cast %54 : vector<4x32xf32> to vector<1x4x32xf32>
    %63 = vector.shape_cast %55 : vector<4x32xf32> to vector<1x4x32xf32>
    %64 = vector.shape_cast %56 : vector<4x32xf32> to vector<1x4x32xf32>
    %65 = tpu.concatenate %57, %58, %59, %60, %61, %62, %63, %64 in 0 : vector<1x4x32xf32>, vector<1x4x32xf32>, vector<1x4x32xf32>, vector<1x4x32xf32>, vector<1x4x32xf32>, vector<1x4x32xf32>, vector<1x4x32xf32>, vector<1x4x32xf32> -> vector<8x4x32xf32>
    %66 = vector.extract_strided_slice %48 {offsets = [0, 32], sizes = [4, 32], strides = [1, 1]} : vector<4x64xf32> to vector<4x32xf32>
    %67 = vector.extract_strided_slice %44 {offsets = [0, 32], sizes = [4, 32], strides = [1, 1]} : vector<4x64xf32> to vector<4x32xf32>
    %68 = vector.extract_strided_slice %40 {offsets = [0, 32], sizes = [4, 32], strides = [1, 1]} : vector<4x64xf32> to vector<4x32xf32>
    %69 = vector.extract_strided_slice %36 {offsets = [0, 32], sizes = [4, 32], strides = [1, 1]} : vector<4x64xf32> to vector<4x32xf32>
    %70 = vector.extract_strided_slice %32 {offsets = [0, 32], sizes = [4, 32], strides = [1, 1]} : vector<4x64xf32> to vector<4x32xf32>
    %71 = vector.extract_strided_slice %28 {offsets = [0, 32], sizes = [4, 32], strides = [1, 1]} : vector<4x64xf32> to vector<4x32xf32>
    %72 = vector.extract_strided_slice %24 {offsets = [0, 32], sizes = [4, 32], strides = [1, 1]} : vector<4x64xf32> to vector<4x32xf32>
    %73 = vector.extract_strided_slice %20 {offsets = [0, 32], sizes = [4, 32], strides = [1, 1]} : vector<4x64xf32> to vector<4x32xf32>
    %74 = vector.shape_cast %66 : vector<4x32xf32> to vector<1x4x32xf32>
    %75 = vector.shape_cast %67 : vector<4x32xf32> to vector<1x4x32xf32>
    %76 = vector.shape_cast %68 : vector<4x32xf32> to vector<1x4x32xf32>
    %77 = vector.shape_cast %69 : vector<4x32xf32> to vector<1x4x32xf32>
    %78 = vector.shape_cast %70 : vector<4x32xf32> to vector<1x4x32xf32>
    %79 = vector.shape_cast %71 : vector<4x32xf32> to vector<1x4x32xf32>
    %80 = vector.shape_cast %72 : vector<4x32xf32> to vector<1x4x32xf32>
    %81 = vector.shape_cast %73 : vector<4x32xf32> to vector<1x4x32xf32>
    %82 = tpu.concatenate %74, %75, %76, %77, %78, %79, %80, %81 in 0 : vector<1x4x32xf32>, vector<1x4x32xf32>, vector<1x4x32xf32>, vector<1x4x32xf32>, vector<1x4x32xf32>, vector<1x4x32xf32>, vector<1x4x32xf32>, vector<1x4x32xf32> -> vector<8x4x32xf32>
    %83 = tpu.concatenate %65, %82 in 2 : vector<8x4x32xf32>, vector<8x4x32xf32> -> vector<8x4x64xf32>
    %c0_14 = arith.constant 0 : index
    %c0_15 = arith.constant 0 : index
    %c0_16 = arith.constant 0 : index
    %84 = vector.load %arg3[%c0_14, %c0_15, %c0_16] : memref<8x4x64xf32, #tpu.memory_space<vmem>>, vector<8x4x64xf32>
    tpu.vector_store %arg3[%c0_14, %c0_15, %c0_16], %83 {strides = array<i32>} : memref<8x4x64xf32, #tpu.memory_space<vmem>>, vector<8x4x64xf32>,
    return
  }
}

</mosaic_0001>

<bundles_post_ra>
// kernel: rnn_encoder_forward.1
= control target key start
LH: loop header
LB: loop body
LE: loop exit
PB: predicated region body
PF: predicated region fallthrough
CT: control target
= control target key end

     0   :  { %v1261_v0 = vmov 0   ;;  %v1262_v8 = vmov 0.0|0.0   ;;  %v1263_v14 = vmov 1   ;;  %vm1264_vm0 = vmmov 0   ;;  %s1527_s0 = inlined_call_operand.vmem [shape: s32[32,2], index: 0, kind: input, shape index: {}]   ;;  %s1528_s1 = inlined_call_operand.vmem [shape: f32[100,64], index: 1, kind: input, shape index: {}]   ;;  %s1529_s2 = inlined_call_operand.vmem [shape: f32[64,64], index: 2, kind: input, shape index: {}]   ;;  %s1530_s3 = inlined_call_operand.vmem [shape: f32[8,4,64], index: 3, kind: output, shape index: {}]  }
   0x1   :  { %1242 = vset.pattern.permute.xlu1 %v1261_v0  ;;  %1240 = vset.pattern.permute.xlu0 %v1261_v0  ;;  %v23_v1 = vld [vmem:[%s1527_s0 + $0x8] sm:$0xff]  ;;  %v22_v2 = vld [vmem:[%s1527_s0] sm:$0xff]  ;;  %v82_v6 = vld [vmem:[%s1528_s1 + $0x10] sm:$0xff]  ;;  %v1265_v32 = vmov 0.0   ;;  %vm106_vm1 = vcmask 1043456   ;;  %v26_v39 = vlaneseq  ;;  %vm93_vm6 = vcmask 818176  }
   0x2   :  { %32 = vperm.xlu1 %1242, %v23_v1   ;;  %29 = vperm.xlu0 %1240, %v22_v2   ;;  %v80_v3 = vld [vmem:[%s1528_s1] sm:$0xff]  ;;  %v81_v4 = vld [vmem:[%s1528_s1 + $0x8] sm:$0xff]  ;;  %v83_v7 = vld [vmem:[%s1528_s1 + $0x18] sm:$0xff]  ;;  %vm195_vm11 = vcmask 523264   ;;  %vm800_vm12 = vcmask 261120   ;;  %vm809_vm13 = vcmask 519168  }
   0x3   :  { %v1115_v5 = vpack.c.bf16 %v81_v4, %v80_v3  ;;  %1139 = vmatprep.subr.bf16.mxu1 %v1262_v8  ;;  %v14_v9 = vld [vmem:[%s1529_s2] sm:$0xff]  ;;  %v15_v10 = vld [vmem:[%s1529_s2 + $0x8] sm:$0xff]  ;;  %v1119_v11 = vpack.c.bf16 %v83_v7, %v82_v6  ;;  %v16_v16 = vld [vmem:[%s1529_s2 + $0x10] sm:$0xff]  ;;  %979 = vmatprep.mubr.msk.f32.mxu1 %vm1264_vm0, %v1265_v32  ;;  %v27_v40 = vand.u32 127, %v26_v39 }
   0x4   :  { %v84_v12 = vld [vmem:[%s1528_s1 + $0x20] sm:$0xff]  ;;  %v1314_v13 = vpack.c.bf16 %v15_v10, %v14_v9  ;;  %v85_v15 = vld [vmem:[%s1528_s1 + $0x28] sm:$0xff]  ;;  %v17_v17 = vld [vmem:[%s1529_s2 + $0x18] sm:$0xff] }
   0x5   :  { %1116 = vmatprep.subr.bf16.mxu0 %v1115_v5  ;;  %v24_v18 = vld [vmem:[%s1527_s0 + $0x10] sm:$0xff]  ;;  %v1123_v19 = vpack.c.bf16 %v85_v15, %v84_v12  ;;  %v1333_v21 = vpack.c.bf16 %v17_v17, %v16_v16  ;;  %v87_v22 = vld [vmem:[%s1528_s1 + $0x38] sm:$0xff]  ;;  %v18_v23 = vld [vmem:[%s1529_s2 + $0x20] sm:$0xff] }
   0x6   :  { %1243 = vset.pattern.permute.xlu1 %v1263_v14  ;;  %1241 = vset.pattern.permute.xlu0 %v1263_v14  ;;  %v86_v20 = vld [vmem:[%s1528_s1 + $0x30] sm:$0xff]  ;;  %v19_v24 = vld [vmem:[%s1529_s2 + $0x28] sm:$0xff]  ;;  %v25_v25 = vld [vmem:[%s1527_s0 + $0x18] sm:$0xff] }
   0x7   :  { %56 = vperm.xlu1 %1243, %v23_v1   ;;  %53 = vperm.xlu0 %1241, %v22_v2   ;;  %v1127_v26 = vpack.c.bf16 %v87_v22, %v86_v20  ;;  %v88_v27 = vld [vmem:[%s1528_s1 + $0x40] sm:$0xff]  ;;  %v1351_v28 = vpack.c.bf16 %v19_v24, %v18_v23  ;;  %v89_v29 = vld [vmem:[%s1528_s1 + $0x48] sm:$0xff]  ;;  %v20_v30 = vld [vmem:[%s1529_s2 + $0x30] sm:$0xff] }
   0x8   :  { %1118 = vmatpush3.bf16.msra.mxu0 %v1115_v5  ;;  %1141 = vmatpush3.bf16.msra.mxu1 %v1314_v13  ;;  %v21_v31 = vld [vmem:[%s1529_s2 + $0x38] sm:$0xff]  ;;  %v1131_v33 = vpack.c.bf16 %v89_v29, %v88_v27  ;;  %v90_v35 = vld [vmem:[%s1528_s1 + $0x50] sm:$0xff]  ;;  %v92_v38 = vld [vmem:[%s1528_s1 + $0x60] sm:$0xf] }
   0x9   :  { %1120 = vmatprep.subr.bf16.mxu0 %v1119_v11  ;;  %1142 = vmatprep.subr.bf16.mxu1 %v1262_v8  ;;  %v1366_v34 = vpack.c.bf16 %v21_v31, %v20_v30  ;;  %v91_v36 = vld [vmem:[%s1528_s1 + $0x58] sm:$0xff] }
   0xa   :  { %v1135_v37 = vpack.c.bf16 %v91_v36, %v90_v35 }
   0xb   :  { %1244 = vset.pattern.permute.xlu1 %v1261_v0  ;;  %59 = vperm.xlu0 %1241, %v24_v18  }
   0xc   :  { %35 = vperm.xlu1 %1244, %v24_v18   ;;  %1122 = vmatpush3.bf16.msra.mxu0 %v1119_v11 }
   0xd   :  { %1124 = vmatprep.subr.bf16.mxu0 %v1123_v19  ;;  %1144 = vmatpush3.bf16.msra.mxu1 %v1333_v21 }
   0xe   :  { %1145 = vmatprep.subr.bf16.mxu1 %v1262_v8 }
   0xf   :  { %62 = vperm.xlu0 %1241, %v25_v25  }
  0x10   :  { %38 = vperm.xlu1 %1244, %v25_v25   ;;  %1126 = vmatpush3.bf16.msra.mxu0 %v1123_v19 }
  0x11   :  { %1128 = vmatprep.subr.bf16.mxu0 %v1127_v26  ;;  %1147 = vmatpush3.bf16.msra.mxu1 %v1351_v28 }
  0x12   :  { %1148 = vmatprep.subr.bf16.mxu1 %v1262_v8 }
  0x14   :  { %1130 = vmatpush3.bf16.msra.mxu0 %v1127_v26 }
  0x15   :  { %1132 = vmatprep.subr.bf16.mxu0 %v1131_v33  ;;  %1150 = vmatpush3.bf16.msra.mxu1 %v1366_v34 }
  0x16   :  { %1151 = vmatprep.subr.bf16.mxu1 %v1262_v8 }
  0x18   :  { %1134 = vmatpush3.bf16.msra.mxu0 %v1131_v33  ;;  %980 = vmatmul.mubr.f32.vlgmr.msra.gmra.mrb[0].mxu1 %v1265_v32 }
  0x19   :  { %1136 = vmatprep.subr.bf16.mxu0 %v1135_v37  ;;  %1153 = vmatpush3.bf16.msra.mxu1 %v1314_v13 }
  0x1a   :  { %1154 = vmatprep.subr.bf16.mxu1 %v1262_v8  ;;  %998 = vmatprep.mubr.msk.f32.mxu1 %vm1264_vm0, %v1265_v32 }
  0x1c   :  { %1138 = vmatpush3.bf16.msra.mxu0 %v1135_v37 }
  0x1d   :  { %955 = vmatprep.subr.msk.mxu0 %vm106_vm1, %v92_v38  ;;  %1156 = vmatpush3.bf16.msra.mxu1 %v1333_v21 }
  0x1e   :  { %1157 = vmatprep.subr.bf16.mxu1 %v1262_v8 }
  0x20   :  { %956 = vmatpush3.msk.msra.mxu0 %vm106_vm1, %v92_v38 }
  0x21   :  { %1159 = vmatpush3.bf16.msra.mxu1 %v1351_v28  ;;  %1163 = vmatprep.subr.bf16.mxu0 %v1262_v8 }
  0x22   :  { %1160 = vmatprep.subr.bf16.mxu1 %v1262_v8 }
  0x25   :  { %1162 = vmatpush3.bf16.msra.mxu1 %v1366_v34 }
  0x26   :  { %1175 = vmatprep.subr.bf16.mxu1 %v1262_v8 }
  0x81   :  { %v30_v41 = vpop.permute.xlu0 %29  ;;  %v33_v42 = vpop.permute.xlu1 %32 }
  0x82   :  { %vm40_vm2 = vcmp.eq.s32.totalorder %v27_v40, %v30_v41  ;;  %vm41_vm3 = vcmp.eq.s32.totalorder %v27_v40, %v33_v42 }
  0x83   :  { %v822_v45 = vsel %vm40_vm2, 1.0, %v1265_v32  ;;  %v823_v46 = vsel %vm41_vm3, 1.0, %v1265_v32 }
  0x86   :  { %v57_v43 = vpop.permute.xlu1 %56  ;;  %v54_v44 = vpop.permute.xlu0 %53 }
  0x87   :  { %vm65_vm4 = vcmp.eq.s32.totalorder %v27_v40, %v57_v43  ;;  %vm64_vm5 = vcmp.eq.s32.totalorder %v27_v40, %v54_v44 }
  0x88   :  { %v827_v47 = vsel %vm65_vm4, 1.0, %v1265_v32  ;;  %v826_v48 = vsel %vm64_vm5, 1.0, %v1265_v32 }
  0x89   :  { %v77_v49 = vadd.f32 %v827_v47, %v823_v46  ;;  %v76_v50 = vadd.f32 %v826_v48, %v822_v45 }
  0x8a   :  { %v60_v51 = vpop.permute.xlu0 %59 }
  0x8b   :  { %vm66_vm7 = vcmp.eq.s32.totalorder %v27_v40, %v60_v51  ;;  %v36_v52 = vpop.permute.xlu1 %35  ;;  %957 = vmatprep.mubr.msk.f32.mxu0 %vm93_vm6, %v76_v50 }
  0x8c   :  { %v828_v53 = vsel %vm66_vm7, 1.0, %v1265_v32  ;;  %vm42_vm8 = vcmp.eq.s32.totalorder %v27_v40, %v36_v52  ;;  %958 = vmatmul.mubr.msk.f32.vlgmr.msra.gmra.mrb[0].mxu0 %vm93_vm6, %v77_v49 }
  0x8d   :  { %v824_v54 = vsel %vm42_vm8, 1.0, %v1265_v32  ;;  %1165 = vmatpush3.bf16.msra.mxu0 %v1314_v13 }
  0x8e   :  { %v78_v55 = vadd.f32 %v828_v53, %v824_v54  ;;  %v63_v56 = vpop.permute.xlu0 %62  ;;  %1166 = vmatprep.subr.bf16.mxu0 %v1262_v8 }
  0x8f   :  { %vm67_vm9 = vcmp.eq.s32.totalorder %v27_v40, %v63_v56  ;;  %v39_v57 = vpop.permute.xlu1 %38 }
  0x90   :  { %v829_v58 = vsel %vm67_vm9, 1.0, %v1265_v32  ;;  %vm43_vm10 = vcmp.eq.s32.totalorder %v27_v40, %v39_v57  ;;  %960 = vmatprep.mubr.msk.f32.mxu0 %vm93_vm6, %v78_v55 }
  0x91   :  { %v825_v59 = vsel %vm43_vm10, 1.0, %v1265_v32  ;;  %1168 = vmatpush3.bf16.msra.mxu0 %v1333_v21 }
  0x92   :  { %v79_v60 = vadd.f32 %v829_v58, %v825_v59  ;;  %1169 = vmatprep.subr.bf16.mxu0 %v1262_v8 }
  0x94   :  { %961 = vmatmul.mubr.msk.f32.gmra.mrb[2].mxu0 %vm93_vm6, %v79_v60 }
  0x95   :  { %1171 = vmatpush3.bf16.msra.mxu0 %v1351_v28  ;;  %1017 = vmatprep.mubr.msk.f32.mxu0 %vm1264_vm0, %v1265_v32 }
  0x96   :  { %1172 = vmatprep.subr.bf16.mxu0 %v1262_v8 }
  0x99   :  { %1174 = vmatpush3.bf16.msra.mxu0 %v1366_v34 }
  0x9a   :  { %1187 = vmatprep.subr.bf16.mxu0 %v1262_v8 }
  0xeb   :  { %v265_v61 = vpop.f32.mrb[0].mxu1 }
  0xec   :  { %v981_v62 = vpop.f32.mrb[1].mxu1 }
 0x15f   :  { %v959_v63 = vpop.f32.mrb[0].mxu0 }
 0x160   :  { %v176_v0 = vpop.f32.mrb[1].mxu0  ;;  %v422_v16 = vrot.slane %v959_v63, 4 }
 0x161   :  { %v266_v1 = vadd.f32 %v265_v61, %v176_v0  ;;  %v271_v5 = vrot.slane %v176_v0, 4 }
 0x163   :  { %1245 = vtanh.f32 %v266_v1 }
 0x167   :  { %v1414_v2 = vpop.f32.mrb[2].mxu0 }
 0x168   :  { %v1416_v3 = vpop.f32.mrb[3].mxu0  ;;  %v724_v38 = vrot.slane %v1414_v2, 4 }
 0x169   :  { %v573_v29 = vrot.slane %v1416_v3, 4 }
 0x16d   :  { %v1418_v4 = vpop.eup %1245 }
 0x16e   :  { %999 = vmatmul.mubr.msk.f32.vlgmr.msra.gmra.mrb[2].mxu1 %vm195_vm11, %v1418_v4 }
 0x16f   :  { %1177 = vmatpush3.bf16.msra.mxu1 %v1314_v13  ;;  %1036 = vmatprep.mubr.msk.f32.mxu1 %vm1264_vm0, %v1265_v32 }
 0x170   :  { %1178 = vmatprep.subr.bf16.mxu1 %v1262_v8 }
 0x173   :  { %1180 = vmatpush3.bf16.msra.mxu1 %v1333_v21 }
 0x174   :  { %1181 = vmatprep.subr.bf16.mxu1 %v1262_v8 }
 0x177   :  { %1183 = vmatpush3.bf16.msra.mxu1 %v1351_v28 }
 0x178   :  { %1184 = vmatprep.subr.bf16.mxu1 %v1262_v8 }
 0x17b   :  { %1186 = vmatpush3.bf16.msra.mxu1 %v1366_v34 }
 0x17c   :  { %1199 = vmatprep.subr.bf16.mxu1 %v1262_v8 }
 0x241   :  { %v342_v6 = vpop.f32.mrb[2].mxu1 }
 0x242   :  { %v343_v7 = vadd.f32 %v342_v6, %v271_v5  ;;  %v1000_v9 = vpop.f32.mrb[3].mxu1 }
 0x244   :  { %1247 = vtanh.f32 %v343_v7 }
 0x24e   :  { %v1432_v10 = vpop.eup %1247 }
 0x24f   :  { %1018 = vmatmul.mubr.msk.f32.vlgmr.msra.gmra.mrb[4].mxu0 %vm195_vm11, %v1432_v10 }
 0x250   :  { %1189 = vmatpush3.bf16.msra.mxu0 %v1314_v13  ;;  %1055 = vmatprep.mubr.msk.f32.mxu0 %vm1264_vm0, %v1265_v32 }
 0x251   :  { %1190 = vmatprep.subr.bf16.mxu0 %v1262_v8 }
 0x254   :  { %1192 = vmatpush3.bf16.msra.mxu0 %v1333_v21 }
 0x255   :  { %1193 = vmatprep.subr.bf16.mxu0 %v1262_v8 }
 0x258   :  { %1195 = vmatpush3.bf16.msra.mxu0 %v1351_v28 }
 0x259   :  { %1196 = vmatprep.subr.bf16.mxu0 %v1262_v8 }
 0x25c   :  { %1198 = vmatpush3.bf16.msra.mxu0 %v1366_v34 }
 0x25d   :  { %1211 = vmatprep.subr.bf16.mxu0 %v1262_v8 }
 0x322   :  { %v416_v11 = vpop.f32.mrb[4].mxu0 }
 0x323   :  { %v417_v12 = vadd.f32 %v959_v63, %v416_v11  ;;  %v1019_v14 = vpop.f32.mrb[5].mxu0 }
 0x325   :  { %1249 = vtanh.f32 %v417_v12 }
 0x32f   :  { %v1250_v15 = vpop.eup %1249 }
 0x330   :  { %1037 = vmatmul.mubr.msk.f32.vlgmr.msra.gmra.mrb[4].mxu1 %vm195_vm11, %v1250_v15 }
 0x331   :  { %1201 = vmatpush3.bf16.msra.mxu1 %v1314_v13  ;;  %1074 = vmatprep.mubr.msk.f32.mxu1 %vm1264_vm0, %v1265_v32 }
 0x332   :  { %1202 = vmatprep.subr.bf16.mxu1 %v1262_v8 }
 0x335   :  { %1204 = vmatpush3.bf16.msra.mxu1 %v1333_v21 }
 0x336   :  { %1205 = vmatprep.subr.bf16.mxu1 %v1262_v8 }
 0x339   :  { %1207 = vmatpush3.bf16.msra.mxu1 %v1351_v28 }
 0x33a   :  { %1208 = vmatprep.subr.bf16.mxu1 %v1262_v8 }
 0x33d   :  { %1210 = vmatpush3.bf16.msra.mxu1 %v1366_v34 }
 0x33e   :  { %1223 = vmatprep.subr.bf16.mxu1 %v1262_v8 }
 0x403   :  { %v493_v17 = vpop.f32.mrb[4].mxu1 }
 0x404   :  { %v494_v18 = vadd.f32 %v493_v17, %v422_v16  ;;  %v1038_v19 = vpop.f32.mrb[5].mxu1 }
 0x406   :  { %1251 = vtanh.f32 %v494_v18 }
 0x410   :  { %v1252_v20 = vpop.eup %1251 }
 0x411   :  { %1056 = vmatmul.mubr.msk.f32.vlgmr.msra.gmra.mrb[6].mxu0 %vm195_vm11, %v1252_v20 }
 0x412   :  { %1213 = vmatpush3.bf16.msra.mxu0 %v1314_v13  ;;  %1093 = vmatprep.mubr.msk.f32.mxu0 %vm1264_vm0, %v1265_v32 }
 0x413   :  { %1214 = vmatprep.subr.bf16.mxu0 %v1262_v8 }
 0x416   :  { %1216 = vmatpush3.bf16.msra.mxu0 %v1333_v21 }
 0x417   :  { %1217 = vmatprep.subr.bf16.mxu0 %v1262_v8 }
 0x41a   :  { %1219 = vmatpush3.bf16.msra.mxu0 %v1351_v28 }
 0x41b   :  { %1220 = vmatprep.subr.bf16.mxu0 %v1262_v8 }
 0x41e   :  { %1222 = vmatpush3.bf16.msra.mxu0 %v1366_v34 }
 0x4e4   :  { %v567_v22 = vpop.f32.mrb[6].mxu0 }
 0x4e5   :  { %v568_v23 = vadd.f32 %v567_v22, %v1416_v3  ;;  %v1057_v24 = vpop.f32.mrb[7].mxu0 }
 0x4e7   :  { %1253 = vtanh.f32 %v568_v23 }
 0x4f1   :  { %v1254_v25 = vpop.eup %1253 }
 0x4f2   :  { %v804_v26 = vsel %vm800_vm12, %v1252_v20, %v1254_v25  ;;  %v805_v27 = vsel %vm800_vm12, %v1254_v25, %v1252_v20  ;;  %1075 = vmatmul.mubr.msk.f32.vlgmr.msra.gmra.mrb[6].mxu1 %vm195_vm11, %v1254_v25 }
 0x4f3   :  { %813 = vst.msk [vmem:[%s1530_s3 + $0xc] sm:$0xf] %vm809_vm13, %v804_v26  ;;  %814 = vst.msk [vmem:[%s1530_s3 + $0x10] sm:$0xf] %vm809_vm13, %v805_v27  ;;  %1225 = vmatpush3.bf16.msra.mxu1 %v1314_v13  ;;  %1112 = vmatprep.mubr.msk.f32.mxu1 %vm1264_vm0, %v1265_v32 }
 0x4f4   :  { %1226 = vmatprep.subr.bf16.mxu1 %v1262_v8 }
 0x4f7   :  { %1228 = vmatpush3.bf16.msra.mxu1 %v1333_v21 }
 0x4f8   :  { %1229 = vmatprep.subr.bf16.mxu1 %v1262_v8 }
 0x4fb   :  { %1231 = vmatpush3.bf16.msra.mxu1 %v1351_v28 }
 0x4fc   :  { %1232 = vmatprep.subr.bf16.mxu1 %v1262_v8 }
 0x4ff   :  { %1234 = vmatpush3.bf16.msra.mxu1 %v1366_v34 }
 0x5c5   :  { %v644_v30 = vpop.f32.mrb[6].mxu1 }
 0x5c6   :  { %v645_v31 = vadd.f32 %v644_v30, %v573_v29  ;;  %v1076_v13 = vpop.f32.mrb[7].mxu1 }
 0x5c8   :  { %1255 = vtanh.f32 %v645_v31 }
 0x5d2   :  { %v1256_v33 = vpop.eup %1255 }
 0x5d3   :  { %v803_v32 = vsel %vm800_vm12, %v1250_v15, %v1256_v33  ;;  %v806_v35 = vsel %vm800_vm12, %v1256_v33, %v1250_v15  ;;  %1094 = vmatmul.mubr.msk.f32.vlgmr.msra.gmra.mrb[8].mxu0 %vm195_vm11, %v1256_v33 }
 0x5d4   :  { %812 = vst.msk [vmem:[%s1530_s3 + $0x8] sm:$0xf] %vm809_vm13, %v803_v32  ;;  %815 = vst.msk [vmem:[%s1530_s3 + $0x14] sm:$0xf] %vm809_vm13, %v806_v35 }
 0x6a6   :  { %v718_v8 = vpop.f32.mrb[8].mxu0 }
 0x6a7   :  { %v719_v21 = vadd.f32 %v1414_v2, %v718_v8  ;;  %v1095_v28 = vpop.f32.mrb[9].mxu0 }
 0x6a9   :  { %1257 = vtanh.f32 %v719_v21 }
 0x6b3   :  { %v1258_v34 = vpop.eup %1257 }
 0x6b4   :  { %v802_v36 = vsel %vm800_vm12, %v1432_v10, %v1258_v34  ;;  %v807_v37 = vsel %vm800_vm12, %v1258_v34, %v1432_v10  ;;  %1113 = vmatmul.mubr.msk.f32.vlgmr.msra.gmra.mrb[8].mxu1 %vm195_vm11, %v1258_v34 }
 0x6b5   :  { %811 = vst.msk [vmem:[%s1530_s3 + $0x4] sm:$0xf] %vm809_vm13, %v802_v36  ;;  %816 = vst.msk [vmem:[%s1530_s3 + $0x18] sm:$0xf] %vm809_vm13, %v807_v37 }
 0x787   :  { %v795_v39 = vpop.f32.mrb[8].mxu1 }
 0x788   :  { %v796_v40 = vadd.f32 %v795_v39, %v724_v38  ;;  %v1114_v41 = vpop.f32.mrb[9].mxu1 }
 0x78a   :  { %1259 = vtanh.f32 %v796_v40 }
 0x794   :  { %v1260_v42 = vpop.eup %1259 }
 0x795   :  { %v801_v43 = vsel %vm800_vm12, %v1418_v4, %v1260_v42  ;;  %v808_v44 = vsel %vm800_vm12, %v1260_v42, %v1418_v4 }
 0x796   :  { %810 = vst.msk [vmem:[%s1530_s3] sm:$0xf] %vm809_vm13, %v801_v43  ;;  %817 = vst.msk [vmem:[%s1530_s3 + $0x1c] sm:$0xf] %vm809_vm13, %v808_v44 }

</bundles_post_ra>
